<compile_context>
chip_gen: v7x
topology: tpu7x:2x2x1
jax: 0.10.0
libtpu: 0.0.40
codegen_flags: <defaults>
</compile_context>

<pallas_src>
import inspect

import jax
import jax.numpy as jnp
from jax import lax
from jax.experimental import pallas as pl
from jax.experimental.pallas import tpu as pltpu


_BATCH_TILE_CAP = 8192                   # ~20 MiB peak working set at this tile size
_VMEM_LIMIT_BYTES = 48 * 1024 * 1024     # > v5e 16 MiB default scope, < v7x 64 MiB physical


def mlp_kernel(x_ref,
               w1_ref, b1_ref,
               w2_ref, b2_ref,
               w3_ref, b3_ref,
               w4_ref, b4_ref,
               o_ref):
    """Fused 4-layer MLP on one batch tile.

    x_ref : (batch_tile, in_dim) f32 block taken directly from the (B, in_dim) input.
    w*    : bf16 PyTorch-layout weights (out, in); b*: f32 (out, 1).
    o_ref : (2, batch_tile) f32, lane-dense.
    """
    xb = x_ref[...].astype(w1_ref.dtype)                        # bf16 (bt, in)

    # Layer 1: contract the feature axis of both operands -> (128, bt).
    # Transposed-RHS MXU form (same as q @ k^T); no transpose ever touches HBM.
    h = lax.dot_general(w1_ref[...], xb,
                        dimension_numbers=(((1,), (1,)), ((), ())),
                        preferred_element_type=jnp.float32) + b1_ref[...]
    h = jnp.maximum(h.astype(w2_ref.dtype), 0.0)                # bf16 ReLU

    h = jnp.dot(w2_ref[...], h, preferred_element_type=jnp.float32) + b2_ref[...]
    h = jnp.maximum(h.astype(w3_ref.dtype), 0.0)

    h = jnp.dot(w3_ref[...], h, preferred_element_type=jnp.float32) + b3_ref[...]
    h = jnp.maximum(h.astype(w4_ref.dtype), 0.0)

    out = jnp.dot(w4_ref[...], h, preferred_element_type=jnp.float32) + b4_ref[...]
    o_ref[...] = out.astype(o_ref.dtype)                        # f32 (2, bt)


def _round_up(n, m):
    return ((n + m - 1) // m) * m


def _choose_batch_tile(batch, cap=_BATCH_TILE_CAP):
    """Lane-axis batch tile: multiple of 128, <= cap, >= 2 grid steps when the
    batch allows it (keeps both v7x TensorCores busy and gives the pipeline
    something to overlap). Tiles are balanced so padding waste stays small."""
    cap = max(128, (cap // 128) * 128)
    b128 = _round_up(batch, 128)
    n_steps = max(1, -(-b128 // cap))
    if n_steps == 1 and b128 > 128:
        n_steps = 2
    return _round_up(-(-b128 // n_steps), 128)


def _supports_buffered_blockspec():
    """Explicit feature check for BlockSpec(pipeline_mode=pl.Buffered(n))."""
    if not hasattr(pl, "Buffered"):
        return False
    try:
        return "pipeline_mode" in inspect.signature(pl.BlockSpec).parameters
    except (TypeError, ValueError):
        return False


def _pallas_forward(x_pad, ws, bs, batch_tile):
    b_pad, in_dim = x_pad.shape
    out_dim = ws[-1].shape[0]
    grid = (b_pad // batch_tile,)

    if _supports_buffered_blockspec():
        def const_spec(shape):
            return pl.BlockSpec(shape, lambda i: (0, 0), pipeline_mode=pl.Buffered(1))
    else:
        def const_spec(shape):
            return pl.BlockSpec(shape, lambda i: (0, 0))

    in_specs = [pl.BlockSpec((batch_tile, in_dim), lambda i: (i, 0))]
    for w, b in zip(ws, bs):
        in_specs.append(const_spec(w.shape))
        in_specs.append(const_spec(b.shape))
    out_spec = pl.BlockSpec((out_dim, batch_tile), lambda i: (0, i))

    # Advisory cost estimate so XLA schedules surrounding ops sensibly.
    dims = [in_dim] + [w.shape[0] for w in ws]
    flops = 2 * b_pad * sum(dims[i] * dims[i + 1] for i in range(len(ws)))
    param_bytes = sum(int(w.size) * w.dtype.itemsize for w in ws) \
                + sum(int(b.size) * b.dtype.itemsize for b in bs)
    bytes_accessed = int(x_pad.size) * 4 + param_bytes + b_pad * out_dim * 4

    return pl.pallas_call(
        mlp_kernel,
        out_shape=jax.ShapeDtypeStruct((out_dim, b_pad), jnp.float32),
        grid_spec=pltpu.PrefetchScalarGridSpec(
            num_scalar_prefetch=0,
            grid=grid,
            in_specs=in_specs,
            out_specs=out_spec,
        ),
        compiler_params=pltpu.CompilerParams(
            dimension_semantics=("parallel",),
            vmem_limit_bytes=_VMEM_LIMIT_BYTES,
        ),
        cost_estimate=pl.CostEstimate(flops=flops, transcendentals=0,
                                      bytes_accessed=bytes_accessed),
    )(x_pad, ws[0], bs[0], ws[1], bs[1], ws[2], bs[2], ws[3], bs[3])


def higgs_classifier_forward(x, params, *, batch_tile=None,
                             compute_dtype=jnp.bfloat16):
    """x: (B, input_dim) f32. params: [(W, b)] in PyTorch layout W=(out,in), b=(out,).
    Returns (B, 2) f32 logits."""
    B, _ = x.shape
    if batch_tile is None:
        batch_tile = _choose_batch_tile(B)
    assert batch_tile % 128 == 0, "batch_tile is the lane axis: use a multiple of 128"

    n_grid = -(-B // batch_tile)
    b_pad = n_grid * batch_tile
    x_pad = x if b_pad == B else jnp.pad(x, ((0, b_pad - B), (0, 0)))

    ws = [w.astype(compute_dtype) for (w, _) in params]                # (out, in) bf16
    bs = [b.reshape(-1, 1).astype(jnp.float32) for (_, b) in params]   # (out, 1) f32

    out_t = _pallas_forward(x_pad, ws, bs, batch_tile)                 # (2, b_pad) f32
    return out_t[:, :B].T                                              # (B, 2) f32


def init_params(key, input_dim):
    """PyTorch nn.Linear-style init: W (out,in), b (out,), U(-1/sqrt(fan_in), +)."""
    dims = [input_dim, 128, 64, 32, 2]
    params = []
    for i in range(4):
        key, kw, kb = jax.random.split(key, 3)
        bound = 1.0 / float(dims[i]) ** 0.5
        w = jax.random.uniform(kw, (dims[i + 1], dims[i]), jnp.float32, -bound, bound)
        b = jax.random.uniform(kb, (dims[i + 1],), jnp.float32, -bound, bound)
        params.append((w, b))
    return params


def reference_forward(x, params, compute_dtype=jnp.bfloat16):
    """Same recipe as the kernel: bf16 matmul operands, f32 accumulate/bias, ReLU."""
    h = x.astype(compute_dtype)
    for i, (w, b) in enumerate(params):
        h = jnp.dot(h, w.T.astype(compute_dtype),
                    preferred_element_type=jnp.float32) + b
        if i < 3:
            h = jnp.maximum(h, 0.0).astype(compute_dtype)
    return h


if __name__ == "__main__":
    INPUT_DIM = 28   # Higgs feature count
    BATCH = 256      # small, but enough for a 2-step "parallel" batch grid

    key = jax.random.PRNGKey(0)
    key, kx = jax.random.split(key)
    x = jax.random.normal(kx, (BATCH, INPUT_DIM), dtype=jnp.float32)
    params = init_params(key, INPUT_DIM)

    fwd = jax.jit(higgs_classifier_forward)
    out = jax.block_until_ready(fwd(x, params))

    ref = reference_forward(x, params)
    assert out.shape == (BATCH, 2)
    assert jnp.allclose(out, ref, atol=1e-3, rtol=1e-3), "mismatch vs JAX reference"

    print("KERNEL_OK")
</pallas_src>

<mosaic_0001>
module attributes {stable_mosaic.version = 11 : i64} {
  func.func @mlp_kernel(%arg0: i32, %arg1: memref<128x28xf32, #tpu.memory_space<vmem>>, %arg2: memref<128x28xbf16, #tpu.memory_space<vmem>>, %arg3: memref<128x1xf32, #tpu.memory_space<vmem>>, %arg4: memref<64x128xbf16, #tpu.memory_space<vmem>>, %arg5: memref<64x1xf32, #tpu.memory_space<vmem>>, %arg6: memref<32x64xbf16, #tpu.memory_space<vmem>>, %arg7: memref<32x1xf32, #tpu.memory_space<vmem>>, %arg8: memref<2x32xbf16, #tpu.memory_space<vmem>>, %arg9: memref<2x1xf32, #tpu.memory_space<vmem>>, %arg10: memref<2x128xf32, #tpu.memory_space<vmem>>) attributes {dimension_semantics = [#tpu.dimension_semantics<parallel>], iteration_bounds = array<i64: 2>, scalar_prefetch = 0 : i64, scratch_operands = 0 : i64, tpu.core_type = #tpu.core_type<tc>, window_params = [{transform_indices = @transform_0, window_bounds = array<i64: 128, 28>}, {pipeline_mode = #tpu.pipeline_mode<synchronous>, transform_indices = @transform_1, window_bounds = array<i64: 128, 28>}, {pipeline_mode = #tpu.pipeline_mode<synchronous>, transform_indices = @transform_2, window_bounds = array<i64: 128, 1>}, {pipeline_mode = #tpu.pipeline_mode<synchronous>, transform_indices = @transform_3, window_bounds = array<i64: 64, 128>}, {pipeline_mode = #tpu.pipeline_mode<synchronous>, transform_indices = @transform_4, window_bounds = array<i64: 64, 1>}, {pipeline_mode = #tpu.pipeline_mode<synchronous>, transform_indices = @transform_5, window_bounds = array<i64: 32, 64>}, {pipeline_mode = #tpu.pipeline_mode<synchronous>, transform_indices = @transform_6, window_bounds = array<i64: 32, 1>}, {pipeline_mode = #tpu.pipeline_mode<synchronous>, transform_indices = @transform_7, window_bounds = array<i64: 2, 32>}, {pipeline_mode = #tpu.pipeline_mode<synchronous>, transform_indices = @transform_8, window_bounds = array<i64: 2, 1>}, {transform_indices = @transform_9, window_bounds = array<i64: 2, 128>}]} {
    %c0 = arith.constant 0 : index
    %c0_0 = arith.constant 0 : index
    %0 = vector.load %arg1[%c0, %c0_0] : memref<128x28xf32, #tpu.memory_space<vmem>>, vector<128x28xf32>
    %1 = arith.truncf %0 : vector<128x28xf32> to vector<128x28xbf16>
    %c0_1 = arith.constant 0 : index
    %c0_2 = arith.constant 0 : index
    %2 = vector.load %arg2[%c0_1, %c0_2] : memref<128x28xbf16, #tpu.memory_space<vmem>>, vector<128x28xbf16>
    %cst = arith.constant dense<0.000000e+00> : vector<128x128xf32>
    %3 = tpu.matmul %2, %1, %cst {dimension_numbers = #tpu.dot_dimension_numbers<[1], [1], [0], [0], [0, 0, 1, 0], [], []>} : vector<128x28xbf16>, vector<128x28xbf16>, vector<128x128xf32> -> vector<128x128xf32>
    %c0_3 = arith.constant 0 : index
    %c0_4 = arith.constant 0 : index
    %4 = vector.load %arg3[%c0_3, %c0_4] : memref<128x1xf32, #tpu.memory_space<vmem>>, vector<128x1xf32>
    %5 = vector.broadcast %4 : vector<128x1xf32> to vector<128x128xf32>
    %6 = arith.addf %3, %5 : vector<128x128xf32>
    %7 = arith.truncf %6 : vector<128x128xf32> to vector<128x128xbf16>
    %cst_5 = arith.constant 0.000000e+00 : bf16
    %8 = vector.broadcast %cst_5 : bf16 to vector<128x128xbf16>
    %9 = arith.maximumf %7, %8 : vector<128x128xbf16>
    %c0_6 = arith.constant 0 : index
    %c0_7 = arith.constant 0 : index
    %10 = vector.load %arg4[%c0_6, %c0_7] : memref<64x128xbf16, #tpu.memory_space<vmem>>, vector<64x128xbf16>
    %cst_8 = arith.constant dense<0.000000e+00> : vector<64x128xf32>
    %11 = tpu.matmul %10, %9, %cst_8 {dimension_numbers = #tpu.dot_dimension_numbers<[1], [0], [0], [1], [0, 0, 1, 1], [], []>} : vector<64x128xbf16>, vector<128x128xbf16>, vector<64x128xf32> -> vector<64x128xf32>
    %c0_9 = arith.constant 0 : index
    %c0_10 = arith.constant 0 : index
    %12 = vector.load %arg5[%c0_9, %c0_10] : memref<64x1xf32, #tpu.memory_space<vmem>>, vector<64x1xf32>
    %13 = vector.broadcast %12 : vector<64x1xf32> to vector<64x128xf32>
    %14 = arith.addf %11, %13 : vector<64x128xf32>
    %15 = arith.truncf %14 : vector<64x128xf32> to vector<64x128xbf16>
    %cst_11 = arith.constant 0.000000e+00 : bf16
    %16 = vector.broadcast %cst_11 : bf16 to vector<64x128xbf16>
    %17 = arith.maximumf %15, %16 : vector<64x128xbf16>
    %c0_12 = arith.constant 0 : index
    %c0_13 = arith.constant 0 : index
    %18 = vector.load %arg6[%c0_12, %c0_13] : memref<32x64xbf16, #tpu.memory_space<vmem>>, vector<32x64xbf16>
    %cst_14 = arith.constant dense<0.000000e+00> : vector<32x128xf32>
    %19 = tpu.matmul %18, %17, %cst_14 {dimension_numbers = #tpu.dot_dimension_numbers<[1], [0], [0], [1], [0, 0, 1, 1], [], []>} : vector<32x64xbf16>, vector<64x128xbf16>, vector<32x128xf32> -> vector<32x128xf32>
    %c0_15 = arith.constant 0 : index
    %c0_16 = arith.constant 0 : index
    %20 = vector.load %arg7[%c0_15, %c0_16] : memref<32x1xf32, #tpu.memory_space<vmem>>, vector<32x1xf32>
    %21 = vector.broadcast %20 : vector<32x1xf32> to vector<32x128xf32>
    %22 = arith.addf %19, %21 : vector<32x128xf32>
    %23 = arith.truncf %22 : vector<32x128xf32> to vector<32x128xbf16>
    %cst_17 = arith.constant 0.000000e+00 : bf16
    %24 = vector.broadcast %cst_17 : bf16 to vector<32x128xbf16>
    %25 = arith.maximumf %23, %24 : vector<32x128xbf16>
    %c0_18 = arith.constant 0 : index
    %c0_19 = arith.constant 0 : index
    %26 = vector.load %arg8[%c0_18, %c0_19] : memref<2x32xbf16, #tpu.memory_space<vmem>>, vector<2x32xbf16>
    %cst_20 = arith.constant dense<0.000000e+00> : vector<2x128xf32>
    %27 = tpu.matmul %26, %25, %cst_20 {dimension_numbers = #tpu.dot_dimension_numbers<[1], [0], [0], [1], [0, 0, 1, 1], [], []>} : vector<2x32xbf16>, vector<32x128xbf16>, vector<2x128xf32> -> vector<2x128xf32>
    %c0_21 = arith.constant 0 : index
    %c0_22 = arith.constant 0 : index
    %28 = vector.load %arg9[%c0_21, %c0_22] : memref<2x1xf32, #tpu.memory_space<vmem>>, vector<2x1xf32>
    %29 = vector.broadcast %28 : vector<2x1xf32> to vector<2x128xf32>
    %30 = arith.addf %27, %29 : vector<2x128xf32>
    %c0_23 = arith.constant 0 : index
    %c0_24 = arith.constant 0 : index
    %31 = vector.load %arg10[%c0_23, %c0_24] : memref<2x128xf32, #tpu.memory_space<vmem>>, vector<2x128xf32>
    tpu.vector_store %arg10[%c0_23, %c0_24], %30 {strides = array<i32>} : memref<2x128xf32, #tpu.memory_space<vmem>>, vector<2x128xf32>,
    return
  }
  func.func @transform_0(%arg0: i32) -> (i32, i32) {
    %c0_i32 = arith.constant 0 : i32
    %c0_i32_0 = arith.constant 0 : i32
    return %arg0, %c0_i32 : i32, i32
  }
  func.func @transform_1(%arg0: i32) -> (i32, i32) {
    %c0_i32 = arith.constant 0 : i32
    %c0_i32_0 = arith.constant 0 : i32
    %c0_i32_1 = arith.constant 0 : i32
    return %c0_i32, %c0_i32_0 : i32, i32
  }
  func.func @transform_2(%arg0: i32) -> (i32, i32) {
    %c0_i32 = arith.constant 0 : i32
    %c0_i32_0 = arith.constant 0 : i32
    %c0_i32_1 = arith.constant 0 : i32
    return %c0_i32, %c0_i32_0 : i32, i32
  }
  func.func @transform_3(%arg0: i32) -> (i32, i32) {
    %c0_i32 = arith.constant 0 : i32
    %c0_i32_0 = arith.constant 0 : i32
    %c0_i32_1 = arith.constant 0 : i32
    return %c0_i32, %c0_i32_0 : i32, i32
  }
  func.func @transform_4(%arg0: i32) -> (i32, i32) {
    %c0_i32 = arith.constant 0 : i32
    %c0_i32_0 = arith.constant 0 : i32
    %c0_i32_1 = arith.constant 0 : i32
    return %c0_i32, %c0_i32_0 : i32, i32
  }
  func.func @transform_5(%arg0: i32) -> (i32, i32) {
    %c0_i32 = arith.constant 0 : i32
    %c0_i32_0 = arith.constant 0 : i32
    %c0_i32_1 = arith.constant 0 : i32
    return %c0_i32, %c0_i32_0 : i32, i32
  }
  func.func @transform_6(%arg0: i32) -> (i32, i32) {
    %c0_i32 = arith.constant 0 : i32
    %c0_i32_0 = arith.constant 0 : i32
    %c0_i32_1 = arith.constant 0 : i32
    return %c0_i32, %c0_i32_0 : i32, i32
  }
  func.func @transform_7(%arg0: i32) -> (i32, i32) {
    %c0_i32 = arith.constant 0 : i32
    %c0_i32_0 = arith.constant 0 : i32
    %c0_i32_1 = arith.constant 0 : i32
    return %c0_i32, %c0_i32_0 : i32, i32
  }
  func.func @transform_8(%arg0: i32) -> (i32, i32) {
    %c0_i32 = arith.constant 0 : i32
    %c0_i32_0 = arith.constant 0 : i32
    %c0_i32_1 = arith.constant 0 : i32
    return %c0_i32, %c0_i32_0 : i32, i32
  }
  func.func @transform_9(%arg0: i32) -> (i32, i32) {
    %c0_i32 = arith.constant 0 : i32
    %c0_i32_0 = arith.constant 0 : i32
    return %c0_i32, %arg0 : i32, i32
  }
}

</mosaic_0001>

<bundles_post_ra>
// kernel: higgs_classifier_forward.1
= control target key start
LH: loop header
LB: loop body
LE: loop exit
PB: predicated region body
PF: predicated region fallthrough
CT: control target
= control target key end

     0   :  { %14 = vsyncpa [#allocation3], 0  ;;  %s1672_s0 = inlined_call_operand.vmem [shape: f32[256,28], index: 0, kind: input, shape index: {}]   ;;  %s1673_s1 = inlined_call_operand.vmem [shape: bf16[128,28], index: 1, kind: input, shape index: {}]   ;;  %s1674_s2 = inlined_call_operand.vmem [shape: f32[128,1], index: 2, kind: input, shape index: {}]   ;;  %s1675_s3 = inlined_call_operand.vmem [shape: bf16[64,128], index: 3, kind: input, shape index: {}]   ;;  %s1676_s4 = inlined_call_operand.vmem [shape: f32[64,1], index: 4, kind: input, shape index: {}]   ;;  %s1677_s5 = inlined_call_operand.vmem [shape: bf16[32,64], index: 5, kind: input, shape index: {}]   ;;  %s1678_s6 = inlined_call_operand.vmem [shape: f32[32,1], index: 6, kind: input, shape index: {}]   ;;  %s1679_s7 = inlined_call_operand.vmem [shape: bf16[2,32], index: 7, kind: input, shape index: {}]   ;;  %s1680_s8 = inlined_call_operand.vmem [shape: f32[2,1], index: 8, kind: input, shape index: {}]   ;;  %s1681_s9 = inlined_call_operand.hbm [shape: f32[2,256], index: 9, kind: output, shape index: {}]  }
   0x1   :  { %16 = vsyncpa [#allocation3 + $0x1], 0  ;;  %s1381_s30 = smov 0   ;;  %s1383_s10 = smov 0  }
   0x2   :  { %s1385_s11 = smov 0   ;;  %s1387_s12 = smov 0  }
   0x3 LB: > { %s1402_s13 = sadd.s32 4294967295, %s1325_s12   ;;  %s1048_s14 = sadd.s32 4294967294, %s1325_s12   ;;  %s1325_s12 = sphi %s1387_s12, %s1687_s12   ;;  %s1321_s11 = sphi %s1385_s11, %s1686_s11   ;;  %s1317_s10 = sphi %s1383_s10, %s1685_s10   ;;  %s1313_s30 = sphi %s1381_s30, %s1684_s30  }
   0x4   : > { %s1406_s15 = sadd.s32 1, %s1325_s12   ;;  %s223_s16 = sadd.s32 1, %s1321_s11 }
   0x5   : > { %s220_s17 = ssub.s32 %s1325_s12, %s1406_s15  ;;  %p233_p0 = scmp.ne.s32.totalorder %s1321_s11, %s1317_s10 }
   0x6   : > { %p221_p1 = scmp.eq.s32.totalorder %s220_s17, 0  ;;  %p234_p2 = scmp.eq.s32.totalorder %s1402_s13, 1 }
   0x7   : > { %p239_p3 = scmp.ne.s32.totalorder %s1317_s10, %s1313_s30  ;;  %p240_p4 = scmp.eq.s32.totalorder %s1048_s14, 1 }
   0x8   : > { %s1417_s18 = scalar_select %p221_p1, %s1321_s11, %s223_s16  }
   0x9   : > { %p1419_p5 = por %p234_p2, %p233_p0  ;;  %p1423_p6 = por %p240_p4, %p239_p3 }
   0xa   : > { %p1051_p7 = scmp.ge.s32.totalorder %s1325_s12, 1  ;;  %p291_p8 = scmp.lt.s32.totalorder %s1325_s12, 3 }
   0xc   : > { %p292_p9 = pnand %p1051_p7, %p291_p8 }
   0xd   : > { %s1053_s21 = sshll.u32 (!%p292_p9), %s1402_s13, 4  ;;  %v1249_v0 = vld [vmem:[%s1673_s1] sm:$0xff] (!%p292_p9)   ;;  %vm510_vm0 = vcmask (!%p292_p9), 228352   ;;  %v1327_v1 = vmov (!%p292_p9), 0   ;;  %v376_v12 = vld [vmem:[%s1674_s2 + $0x10] sm:$0xff] (!%p292_p9)  ;;  %v375_v13 = vld [vmem:[%s1674_s2 + $0x8] sm:$0xff] (!%p292_p9) }
   0xe   : > { %295 = sbr.rel (%p292_p9) target bundleno = 1037 (0x40d), region = 56  ;;  %p328_p10 = scmp.lt.s32.totalorder (!%p292_p9), %s1053_s21, 31  ;;  %1137 = vmatprep.mubr.msk.bf16.mxu0 (!%p292_p9), %vm510_vm0, %v1249_v0  ;;  %1247 = vset.pattern.permute.xlu0 (!%p292_p9), %v1327_v1  ;;  %v374_v11 = vld [vmem:[%s1674_s2] sm:$0xff] (!%p292_p9)  ;;  %v377_v16 = vld [vmem:[%s1674_s2 + $0x18] sm:$0xff] (!%p292_p9)  ;;  %v379_v18 = vld [vmem:[%s1674_s2 + $0x28] sm:$0xff] (!%p292_p9)  ;;  %vm863_vm1 = vcmask (!%p292_p9), 523264  }
   0xf   : > { %1248 = vset.pattern.permute.xlu1 (!%p292_p9), %v1327_v1  ;;  %392 = vperm.xlu0 (!%p292_p9), %1247, %v374_v11   ;;  %v378_v17 = vld [vmem:[%s1674_s2 + $0x20] sm:$0xff] (!%p292_p9)  ;;  %v380_v21 = vld [vmem:[%s1674_s2 + $0x30] sm:$0xff] (!%p292_p9)  ;;  %v381_v23 = vld [vmem:[%s1674_s2 + $0x38] sm:$0xff] (!%p292_p9)  ;;  %vm1329_vm2 = vmmov (!%p292_p9), 0   ;;  %vm930_vm3 = vcmask (!%p292_p9), 261120   ;;  %s1081_s23 = sshll.u32 (!%p292_p9), %s1402_s13, 5 }
  0x10   : > { %402 = vperm.xlu1 (!%p292_p9), %1248, %v376_v12   ;;  %v382_v25 = vld [vmem:[%s1674_s2 + $0x40] sm:$0xff] (!%p292_p9)  ;;  %v383_v26 = vld [vmem:[%s1674_s2 + $0x48] sm:$0xff] (!%p292_p9)  ;;  %v384_v29 = vld [vmem:[%s1674_s2 + $0x50] sm:$0xff] (!%p292_p9)  ;;  %s1630_s29 = scalar_lea.hbm (!%p292_p9), %s1681_s9, %s1081_s23  ;;  %s1330_s16 = smov (!%p292_p9), [#allocation2]  }
  0x11   : > { %v385_v32 = vld [vmem:[%s1674_s2 + $0x58] sm:$0xff] (!%p292_p9)  ;;  %v386_v33 = vld [vmem:[%s1674_s2 + $0x60] sm:$0xff] (!%p292_p9)  ;;  %v387_v34 = vld [vmem:[%s1674_s2 + $0x68] sm:$0xff] (!%p292_p9)  ;;  %s1267_s17 = sshll.u32 (!%p292_p9), %s1330_s16, 4  ;;  %s1268_s17 = int_to_ptr.vmem [resolvable:$false] %s1267_s17 }
  0x12   : > { %v388_v37 = vld [vmem:[%s1674_s2 + $0x70] sm:$0xff] (!%p292_p9)  ;;  %v389_v40 = vld [vmem:[%s1674_s2 + $0x78] sm:$0xff] (!%p292_p9)  ;;  %v680_v41 = vld [vmem:[%s1676_s4] sm:$0xff] (!%p292_p9) }
  0x13   : > { %397 = vperm.xlu0 (!%p292_p9), %1247, %v375_v13   ;;  %v681_v42 = vld [vmem:[%s1676_s4 + $0x8] sm:$0xff] (!%p292_p9)  ;;  %v682_v45 = vld [vmem:[%s1676_s4 + $0x10] sm:$0xff] (!%p292_p9)  ;;  %v683_v48 = vld [vmem:[%s1676_s4 + $0x18] sm:$0xff] (!%p292_p9) }
  0x14   : > { %407 = vperm.xlu1 (!%p292_p9), %1248, %v377_v16   ;;  %v684_v49 = vld [vmem:[%s1676_s4 + $0x20] sm:$0xff] (!%p292_p9)  ;;  %v685_v50 = vld [vmem:[%s1676_s4 + $0x28] sm:$0xff] (!%p292_p9)  ;;  %v686_v53 = vld [vmem:[%s1676_s4 + $0x30] sm:$0xff] (!%p292_p9) }
  0x15   : > { %s1689_s21 = smov (!%p328_p10, %s1053_s21), 31  ;;  %v687_v56 = vld [vmem:[%s1676_s4 + $0x38] sm:$0xff]  ;;  %v829_v57 = vld [vmem:[%s1678_s6] sm:$0xff]  ;;  %v830_v58 = vld [vmem:[%s1678_s6 + $0x8] sm:$0xff] }
  0x16   : > { %s1054_s24 = sshll.u32 %s1689_s21, 3  ;;  %v831_v59 = vld [vmem:[%s1678_s6 + $0x10] sm:$0xff]  ;;  %v832_v61 = vld [vmem:[%s1678_s6 + $0x18] sm:$0xff]  ;;  %v924_v62 = vld [vmem:[%s1680_s8] sm:$0x3]  ;;  %s1269_s21 = scalar_lea.vmem %s1268_s17, 64 }
  0x17   : > { %s1439_s27 = scalar_lea.vmem %s1672_s0, %s1054_s24  ;;  %412 = vperm.xlu0 %1247, %v378_v17   ;;  %v1250_v63 = vld [vmem:[%s1673_s1 + $0x8] sm:$0xff]   ;;  %v1251_v0 = vld [vmem:[%s1673_s1 + $0x10] sm:$0xff]  }
  0x18   : > { %v334_v2 = vld [vmem:[%s1439_s27] sm:$0xff]  ;;  %v335_v3 = vld [vmem:[%s1439_s27 + $0x8] sm:$0xff]  ;;  %v336_v4 = vld [vmem:[%s1439_s27 + $0x10] sm:$0xff]  ;;  %417 = vperm.xlu1 %1248, %v379_v18  }
  0x19   : > { %v350_v5 = vpack.c.bf16 %v335_v3, %v334_v2  ;;  %v337_v6 = vld [vmem:[%s1439_s27 + $0x18] sm:$0xff]  ;;  %v338_v9 = vld [vmem:[%s1439_s27 + $0x20] sm:$0xff]  ;;  %v339_v10 = vld [vmem:[%s1439_s27 + $0x28] sm:$0xff] }
  0x1a   : > { %v351_v7 = vpack.c.bf16 %v337_v6, %v336_v4  ;;  %v352_v15 = vpack.c.bf16 %v339_v10, %v338_v9  ;;  %v340_v19 = vld [vmem:[%s1439_s27 + $0x30] sm:$0xff]  ;;  %v341_v20 = vld [vmem:[%s1439_s27 + $0x38] sm:$0xff]  ;;  %v342_v27 = vld [vmem:[%s1439_s27 + $0x40] sm:$0xff] }
  0x1b   : > { %1197 = vmatprep.subr.msk.bf16.mxu0 %vm510_vm0, %v350_v5  ;;  %v536_v8 = vsel %vm510_vm0, %v350_v5, 0  ;;  %v353_v24 = vpack.c.bf16 %v341_v20, %v340_v19  ;;  %422 = vperm.xlu0 %1247, %v380_v21   ;;  %v343_v28 = vld [vmem:[%s1439_s27 + $0x48] sm:$0xff]  ;;  %v344_v35 = vld [vmem:[%s1439_s27 + $0x50] sm:$0xff]  ;;  %v345_v36 = vld [vmem:[%s1439_s27 + $0x58] sm:$0xff] }
  0x1c   : > { %1122 = vmatpush3.bf16.xpose.msra.mxu0 %v536_v8  ;;  %v539_v14 = vsel %vm510_vm0, %v351_v7, 0  ;;  %v542_v22 = vsel %vm510_vm0, %v352_v15, 0  ;;  %427 = vperm.xlu1 %1248, %v381_v23   ;;  %v354_v31 = vpack.c.bf16 %v343_v28, %v342_v27  ;;  %v355_v39 = vpack.c.bf16 %v345_v36, %v344_v35  ;;  %v346_v43 = vld [vmem:[%s1439_s27 + $0x60] sm:$0xff]  ;;  %v347_v44 = vld [vmem:[%s1439_s27 + $0x68] sm:$0xff]  ;;  %v348_v51 = vld [vmem:[%s1439_s27 + $0x70] sm:$0xff] }
  0x1d   : > { %1198 = vmatprep.subr.msk.bf16.mxu0 %vm510_vm0, %v351_v7  ;;  %v545_v30 = vsel %vm510_vm0, %v353_v24, 0  ;;  %v356_v47 = vpack.c.bf16 %v347_v44, %v346_v43  ;;  %v349_v52 = vld [vmem:[%s1439_s27 + $0x78] sm:$0xff]  ;;  %v1253_v3 = vld [vmem:[%s1673_s1 + $0x20] sm:$0xff]   ;;  %v1254_v4 = vld [vmem:[%s1673_s1 + $0x28] sm:$0xff]   ;;  %s324_s27 = sand.u32 1, %s1317_s10  }
  0x1e   : > { %v548_v38 = vsel %vm510_vm0, %v354_v31, 0  ;;  %v551_v46 = vsel %vm510_vm0, %v355_v39, 0  ;;  %v357_v55 = vpack.c.bf16 %v349_v52, %v348_v51  ;;  %v1252_v2 = vld [vmem:[%s1673_s1 + $0x18] sm:$0xff]   ;;  %v1255_v5 = vld [vmem:[%s1673_s1 + $0x30] sm:$0xff]   ;;  %v1257_v7 = vld [vmem:[%s1675_s3] sm:$0xff]   ;;  %s1052_s22 = sshll.u32 %s324_s27, 1 }
  0x1f   : > { %432 = vperm.xlu0 %1247, %v382_v25   ;;  %v554_v54 = vsel %vm510_vm0, %v356_v47, 0  ;;  %v1256_v6 = vld [vmem:[%s1673_s1 + $0x38] sm:$0xff]   ;;  %1169 = vmatprep.mubr.bf16.mxu1 %v1257_v7  ;;  %s326_s24 = scalar_lea.vmem [#allocation2], %s1052_s22  ;;  %s976_s13 = scalar_lea.sflag [#allocation3], %s324_s27 }
  0x20   : > { %437 = vperm.xlu1 %1248, %v383_v26   ;;  %v557_v60 = vsel %vm510_vm0, %v357_v55, 0  ;;  %s989_s25 = sshll.u32 %s326_s24, 4  ;;  %s1632_s25 = int_to_ptr.vmem [resolvable:$true] %s989_s25 }
  0x21   : > { %s1263_s14 = scalar_lea.vmem %s1632_s25, 32  ;;  %p1270_p0 = scmp.lt.s32.totalorder %s1632_s25, %s1268_s17 }
  0x22   : > { %p1264_p11 = scmp.ne.s32.totalorder %s1632_s25, %s1263_s14  ;;  %p1271_p1 = scmp.lt.s32.totalorder %s1269_s21, %s1263_s14 }
  0x23   : > { %442 = vperm.xlu0 %1247, %v384_v29  }
  0x24   : > { %1124 = vmatpush3.bf16.xpose.msra.mxu0 %v539_v14  ;;  %447 = vperm.xlu1 %1248, %v385_v32   ;;  %p1265_p12 = pnand %p1264_p11, %p1419_p5  ;;  %p1272_p2 = por %p1271_p1, %p1270_p0 }
  0x25   : > { %1199 = vmatprep.subr.msk.bf16.mxu0 %vm510_vm0, %v352_v15 }
  0x26   : > { %p1266_p13 = pneg %p1265_p12 }
  0x27   : > { %452 = vperm.xlu0 %1247, %v386_v33  }
  0x28   : > { %457 = vperm.xlu1 %1248, %v387_v34   ;;  %p1273_p3 = pnand %p1272_p2, %p1266_p13 }
  0x2b   : > { %462 = vperm.xlu0 %1247, %v388_v37  }
  0x2c   : > { %1126 = vmatpush3.bf16.xpose.msra.mxu0 %v542_v22  ;;  %467 = vperm.xlu1 %1248, %v389_v40  }
  0x2d   : > { %1200 = vmatprep.subr.msk.bf16.mxu0 %vm510_vm0, %v353_v24 }
  0x2f   : > { %690 = vperm.xlu0 %1247, %v680_v41  }
  0x30   : > { %695 = vperm.xlu1 %1248, %v681_v42  }
  0x33   : > { %700 = vperm.xlu0 %1247, %v682_v45  }
  0x34   : > { %1128 = vmatpush3.bf16.xpose.msra.mxu0 %v545_v30  ;;  %705 = vperm.xlu1 %1248, %v683_v48  }
  0x35   : > { %1201 = vmatprep.subr.msk.bf16.mxu0 %vm510_vm0, %v354_v31 }
  0x37   : > { %710 = vperm.xlu0 %1247, %v684_v49  }
  0x38   : > { %715 = vperm.xlu1 %1248, %v685_v50  }
  0x3b   : > { %720 = vperm.xlu0 %1247, %v686_v53  }
  0x3c   : > { %1130 = vmatpush3.bf16.xpose.msra.mxu0 %v548_v38  ;;  %725 = vperm.xlu1 %1248, %v687_v56  }
  0x3d   : > { %1202 = vmatprep.subr.msk.bf16.mxu0 %vm510_vm0, %v355_v39 }
  0x3f   : > { %835 = vperm.xlu0 %1247, %v829_v57  }
  0x40   : > { %840 = vperm.xlu1 %1248, %v830_v58  }
  0x43   : > { %845 = vperm.xlu0 %1247, %v831_v59  }
  0x44   : > { %1132 = vmatpush3.bf16.xpose.msra.mxu0 %v551_v46  ;;  %850 = vperm.xlu1 %1248, %v832_v61  }
  0x45   : > { %1203 = vmatprep.subr.msk.bf16.mxu0 %vm510_vm0, %v356_v47 }
  0x47   : > { %927 = vperm.xlu0 %1247, %v924_v62  }
  0x4c   : > { %1134 = vmatpush3.bf16.xpose.msra.mxu0 %v554_v54 }
  0x4d   : > { %1204 = vmatprep.subr.msk.bf16.mxu0 %vm510_vm0, %v357_v55 }
  0x54   : > { %1136 = vmatpush3.bf16.xpose.msra.mxu0 %v557_v60 }
  0x5b   : > { %1138 = vmatmul.mubr.msk.bf16.vlgmr.msra.gmra.mrb[0].mxu0 %vm510_vm0, %v1250_v63 }
  0x5c   : > { %1141 = vmatprep.mubr.msk.bf16.mxu0 %vm510_vm0, %v1251_v0 }
  0x63   : > { %1142 = vmatmul.mubr.msk.bf16.gmra.mrb[4].mxu0 %vm510_vm0, %v1252_v2 }
  0x64   : > { %1145 = vmatprep.mubr.msk.bf16.mxu0 %vm510_vm0, %v1253_v3 }
  0x6b   : > { %1146 = vmatmul.mubr.msk.bf16.gmra.mrb[8].mxu0 %vm510_vm0, %v1254_v4 }
  0x6c   : > { %1149 = vmatprep.mubr.msk.bf16.mxu0 %vm510_vm0, %v1255_v5 }
  0x73   : > { %1150 = vmatmul.mubr.msk.bf16.gmra.mrb[12].mxu0 %vm510_vm0, %v1256_v6 }
  0x8e   : > { %v393_v8 = vpop.permute.xlu0 %392 }
  0x8f   : > { %v403_v9 = vpop.permute.xlu1 %402 }
  0x92   : > { %v398_v10 = vpop.permute.xlu0 %397 }
  0x93   : > { %v408_v11 = vpop.permute.xlu1 %407 }
  0x96   : > { %v413_v12 = vpop.permute.xlu0 %412 }
  0x97   : > { %v418_v13 = vpop.permute.xlu1 %417 }
  0x9a   : > { %v423_v15 = vpop.permute.xlu0 %422 }
  0x9b   : > { %v428_v17 = vpop.permute.xlu1 %427 }
  0x9e   : > { %v433_v26 = vpop.permute.xlu0 %432 }
  0x9f   : > { %v438_v27 = vpop.permute.xlu1 %437 }
  0xa2   : > { %v443_v38 = vpop.permute.xlu0 %442 }
  0xa3   : > { %v448_v40 = vpop.permute.xlu1 %447 }
  0xa6   : > { %v453_v47 = vpop.permute.xlu0 %452 }
  0xa7   : > { %v458_v51 = vpop.permute.xlu1 %457 }
  0xaa   : > { %v463_v58 = vpop.permute.xlu0 %462 }
  0xab   : > { %v468_v60 = vpop.permute.xlu1 %467 }
 0x12e   : > { %v1139_v14 = vpop.f32.mrb[0].mxu0 }
 0x12f   : > { %v593_v16 = vpop.f32.mrb[1].mxu0  ;;  %v602_v19 = vadd.f32 %v1139_v14, %v403_v9  ;;  %v1258_v9 = vld [vmem:[%s1675_s3 + $0x8] sm:$0xff]   ;;  %v696_v14 = vpop.permute.xlu1 %695 }
 0x130   : > { %v1140_v18 = vpop.f32.mrb[2].mxu0  ;;  %v594_v22 = vadd.f32 %v593_v16, %v393_v8 }
 0x131   : > { %v605_v20 = vadd.f32 %v1140_v18, %v408_v11  ;;  %v596_v21 = vpop.f32.mrb[3].mxu0  ;;  %v1260_v11 = vld [vmem:[%s1675_s3 + $0x18] sm:$0xff]  }
 0x132   : > { %v597_v23 = vadd.f32 %v596_v21, %v398_v10  ;;  %v1259_v10 = vld [vmem:[%s1675_s3 + $0x10] sm:$0xff]  }
 0x133   : > { %v657_v24 = vpack.c.bf16 %v605_v20, %v602_v19  ;;  %v706_v16 = vpop.permute.xlu1 %705 }
 0x134   : > { %v656_v25 = vpack.c.bf16 %v597_v23, %v594_v22 }
 0x135   : > { %v665_v32 = vmax.bf16 %v1327_v1, %v657_v24 }
 0x136   : > { %v1143_v28 = vpop.f32.mrb[4].mxu0  ;;  %v664_v29 = vmax.bf16 %v1327_v1, %v656_v25 }
 0x137   : > { %v609_v30 = vpop.f32.mrb[5].mxu0  ;;  %v618_v33 = vadd.f32 %v1143_v28, %v423_v15  ;;  %v716_v24 = vpop.permute.xlu1 %715 }
 0x138   : > { %v1144_v31 = vpop.f32.mrb[6].mxu0  ;;  %1153 = vmatprep.subr.bf16.mxu1 %v664_v29  ;;  %v610_v36 = vadd.f32 %v609_v30, %v413_v12  ;;  %v1261_v12 = vld [vmem:[%s1677_s5] sm:$0xff]  }
 0x139   : > { %v621_v34 = vadd.f32 %v1144_v31, %v428_v17  ;;  %v612_v35 = vpop.f32.mrb[7].mxu0  ;;  %1154 = vmatpush3.bf16.msra.mxu1 %v664_v29 }
 0x13a   : > { %v613_v37 = vadd.f32 %v612_v35, %v418_v13  ;;  %1155 = vmatprep.subr.bf16.mxu1 %v665_v32  ;;  %v691_v13 = vpop.permute.xlu0 %690 }
 0x13b   : > { %v659_v39 = vpack.c.bf16 %v621_v34, %v618_v33  ;;  %v726_v33 = vpop.permute.xlu1 %725 }
 0x13c   : > { %v658_v41 = vpack.c.bf16 %v613_v37, %v610_v36 }
 0x13d   : > { %1156 = vmatpush3.bf16.msra.mxu1 %v665_v32  ;;  %v667_v46 = vmax.bf16 %v1327_v1, %v659_v39 }
 0x13e   : > { %v1147_v42 = vpop.f32.mrb[8].mxu0  ;;  %v666_v43 = vmax.bf16 %v1327_v1, %v658_v41  ;;  %v701_v15 = vpop.permute.xlu0 %700 }
 0x13f   : > { %v625_v44 = vpop.f32.mrb[9].mxu0  ;;  %v634_v48 = vadd.f32 %v1147_v42, %v443_v38 }
 0x140   : > { %v1148_v45 = vpop.f32.mrb[10].mxu0  ;;  %1157 = vmatprep.subr.bf16.mxu1 %v666_v43  ;;  %v626_v52 = vadd.f32 %v625_v44, %v433_v26 }
 0x141   : > { %v637_v49 = vadd.f32 %v1148_v45, %v448_v40  ;;  %v628_v50 = vpop.f32.mrb[11].mxu0  ;;  %1158 = vmatpush3.bf16.msra.mxu1 %v666_v43  ;;  %v1262_v45 = vld [vmem:[%s1677_s5 + $0x8] sm:$0xff]  }
 0x142   : > { %v629_v53 = vadd.f32 %v628_v50, %v438_v27  ;;  %1159 = vmatprep.subr.bf16.mxu1 %v667_v46  ;;  %v711_v20 = vpop.permute.xlu0 %710 }
 0x143   : > { %v661_v54 = vpack.c.bf16 %v637_v49, %v634_v48  ;;  %v841_v48 = vpop.permute.xlu1 %840 }
 0x144   : > { %v660_v55 = vpack.c.bf16 %v629_v53, %v626_v52 }
 0x145   : > { %1160 = vmatpush3.bf16.msra.mxu1 %v667_v46  ;;  %v669_v62 = vmax.bf16 %v1327_v1, %v661_v54  ;;  %v1328_v46 = vmov 0.0  }
 0x146   : > { %v1151_v56 = vpop.f32.mrb[12].mxu0  ;;  %v668_v57 = vmax.bf16 %v1327_v1, %v660_v55  ;;  %v721_v31 = vpop.permute.xlu0 %720 }
 0x147   : > { %v641_v59 = vpop.f32.mrb[13].mxu0  ;;  %v650_v63 = vadd.f32 %v1151_v56, %v463_v58  ;;  %v851_v52 = vpop.permute.xlu1 %850 }
 0x148   : > { %v1152_v61 = vpop.f32.mrb[14].mxu0  ;;  %1161 = vmatprep.subr.bf16.mxu1 %v668_v57  ;;  %v642_v3 = vadd.f32 %v641_v59, %v453_v47 }
 0x149   : > { %v653_v0 = vadd.f32 %v1152_v61, %v468_v60  ;;  %v644_v2 = vpop.f32.mrb[15].mxu0  ;;  %1162 = vmatpush3.bf16.msra.mxu1 %v668_v57 }
 0x14a   : > { %v645_v4 = vadd.f32 %v644_v2, %v458_v51  ;;  %1163 = vmatprep.subr.bf16.mxu1 %v669_v62  ;;  %v836_v47 = vpop.permute.xlu0 %835 }
 0x14b   : > { %v663_v5 = vpack.c.bf16 %v653_v0, %v650_v63  ;;  %v923_v63 = vld [vmem:[%s1679_s7] sm:$0x1] }
 0x14c   : > { %v662_v6 = vpack.c.bf16 %v645_v4, %v642_v3 }
 0x14d   : > { %1164 = vmatpush3.bf16.msra.mxu1 %v669_v62  ;;  %v671_v8 = vmax.bf16 %v1327_v1, %v663_v5 }
 0x14e   : > { %v670_v7 = vmax.bf16 %v1327_v1, %v662_v6  ;;  %v846_v50 = vpop.permute.xlu0 %845 }
 0x150   : > { %1165 = vmatprep.subr.bf16.mxu1 %v670_v7 }
 0x151   : > { %1166 = vmatpush3.bf16.msra.mxu1 %v670_v7 }
 0x152   : > { %1167 = vmatprep.subr.bf16.mxu1 %v671_v8  ;;  %v928_v0 = vpop.permute.xlu0 %927 }
 0x155   : > { %1168 = vmatpush3.bf16.msra.mxu1 %v671_v8 }
 0x158   : > { %1170 = vmatmul.mubr.bf16.vlgmr.msra.gmra.mrb[0].mxu1 %v1258_v9 }
 0x159   : > { %1173 = vmatprep.mubr.bf16.mxu1 %v1259_v10 }
 0x160   : > { %1174 = vmatmul.mubr.bf16.gmra.mrb[4].mxu1 %v1260_v11 }
 0x161   : > { %1185 = vmatprep.mubr.msk.bf16.mxu1 %vm863_vm1, %v1261_v12 }
 0x22b   : > { %v1171_v17 = vpop.f32.mrb[0].mxu1 }
 0x22c   : > { %v786_v18 = vpop.f32.mrb[1].mxu1  ;;  %v795_v21 = vadd.f32 %v1171_v17, %v701_v15 }
 0x22d   : > { %v1172_v19 = vpop.f32.mrb[2].mxu1  ;;  %v787_v25 = vadd.f32 %v786_v18, %v691_v13 }
 0x22e   : > { %v798_v22 = vadd.f32 %v1172_v19, %v706_v16  ;;  %v789_v23 = vpop.f32.mrb[3].mxu1 }
 0x22f   : > { %v790_v26 = vadd.f32 %v789_v23, %v696_v14 }
 0x230   : > { %v818_v27 = vpack.c.bf16 %v798_v22, %v795_v21 }
 0x231   : > { %v817_v28 = vpack.c.bf16 %v790_v26, %v787_v25 }
 0x232   : > { %v822_v35 = vmax.bf16 %v1327_v1, %v818_v27 }
 0x233   : > { %v1175_v29 = vpop.f32.mrb[4].mxu1  ;;  %v821_v30 = vmax.bf16 %v1327_v1, %v817_v28 }
 0x234   : > { %v802_v32 = vpop.f32.mrb[5].mxu1  ;;  %v811_v36 = vadd.f32 %v1175_v29, %v721_v31 }
 0x235   : > { %v1176_v34 = vpop.f32.mrb[6].mxu1  ;;  %1177 = vmatprep.subr.bf16.mxu1 %v821_v30  ;;  %v803_v39 = vadd.f32 %v802_v32, %v711_v20 }
 0x236   : > { %v814_v37 = vadd.f32 %v1176_v34, %v726_v33  ;;  %v805_v38 = vpop.f32.mrb[7].mxu1  ;;  %1178 = vmatpush3.bf16.msra.mxu1 %v821_v30 }
 0x237   : > { %v806_v40 = vadd.f32 %v805_v38, %v716_v24  ;;  %1179 = vmatprep.subr.bf16.mxu1 %v822_v35 }
 0x238   : > { %v820_v41 = vpack.c.bf16 %v814_v37, %v811_v36 }
 0x239   : > { %v819_v42 = vpack.c.bf16 %v806_v40, %v803_v39 }
 0x23a   : > { %1180 = vmatpush3.bf16.msra.mxu1 %v822_v35  ;;  %v824_v44 = vmax.bf16 %v1327_v1, %v820_v41 }
 0x23b   : > { %v823_v43 = vmax.bf16 %v1327_v1, %v819_v42 }
 0x23d   : > { %1181 = vmatprep.subr.bf16.mxu1 %v823_v43 }
 0x23e   : > { %1182 = vmatpush3.bf16.msra.mxu1 %v823_v43 }
 0x23f   : > { %1183 = vmatprep.subr.bf16.mxu1 %v824_v44 }
 0x242   : > { %1184 = vmatpush3.bf16.msra.mxu1 %v824_v44 }
 0x243   : > { %1189 = vmatprep.subr.bf16.mxu1 %v1328_v46 }
 0x245   : > { %1186 = vmatmul.mubr.msk.bf16.vlgmr.msra.gmra.mrb[8].mxu1 %vm863_vm1, %v1262_v45 }
 0x246   : > { %1193 = vmatprep.mubr.msk.bf16.mxu1 %vm1329_vm2, %v1328_v46 }
 0x318   : > { %v1187_v49 = vpop.f32.mrb[8].mxu1 }
 0x319   : > { %v904_v51 = vpop.f32.mrb[9].mxu1  ;;  %v913_v54 = vadd.f32 %v1187_v49, %v846_v50 }
 0x31a   : > { %v1188_v53 = vpop.f32.mrb[10].mxu1  ;;  %v905_v57 = vadd.f32 %v904_v51, %v836_v47 }
 0x31b   : > { %v916_v55 = vadd.f32 %v1188_v53, %v851_v52  ;;  %v907_v56 = vpop.f32.mrb[11].mxu1 }
 0x31c   : > { %v908_v58 = vadd.f32 %v907_v56, %v841_v48 }
 0x31d   : > { %v920_v59 = vpack.c.bf16 %v916_v55, %v913_v54 }
 0x31e   : > { %v919_v60 = vpack.c.bf16 %v908_v58, %v905_v57 }
 0x31f   : > { %v922_v62 = vmax.bf16 %v1327_v1, %v920_v59 }
 0x320   : > { %v921_v61 = vmax.bf16 %v1327_v1, %v919_v60 }
 0x322   : > { %1190 = vmatpush3.bf16.msra.mxu1 %v921_v61 }
 0x323   : > { %1191 = vmatprep.subr.bf16.mxu1 %v1328_v46 }
 0x326   : > { %1192 = vmatpush3.bf16.msra.mxu1 %v922_v62 }
 0x329   : > { %1194 = vmatmul.mubr.msk.bf16.vlgmr.msra.gmra.mrb[12].mxu1 %vm930_vm3, %v923_v63 }
 0x3fc   : > { %v968_v2 = vpop.f32.mrb[12].mxu1 }
 0x3fd   : > { %v969_v3 = vadd.f32 %v968_v2, %v928_v0  ;;  %v1195_v4 = vpop.f32.mrb[13].mxu1 }
 0x3fe   : > { %v971_v1 = vpop.f32.mrb[14].mxu1 }
 0x3ff   : > { %974 = vst [vmem:[%s326_s24] sm:$0x3] %v969_v3  ;;  %v1196_v5 = vpop.f32.mrb[15].mxu1 }
 0x400   : > { %1276 = shalt.err (!%p1273_p3)
}
 0x401   : > { %s1277_s27 = scalar_lea.hbm %s1630_s29, 32  ;;  %s1281_s24 = scalar_lea.hbm %s1681_s9, 64 }
 0x402   : > { %p1278_p4 = scmp.ne.s32.totalorder %s1630_s29, %s1277_s27  ;;  %p1282_p9 = scmp.lt.u32.totalorder %s1630_s29, %s1681_s9 }
 0x403   : > { %p1283_p10 = scmp.lt.u32.totalorder %s1281_s24, %s1277_s27  ;;  %p1285_p12 = scmp.lt.u32.totalorder %s1277_s27, %s1630_s29 }
 0x404   : > { %p1279_p7 = pnand %p1278_p4, %p1419_p5 }
 0x405   : > { %p1284_p11 = por %p1283_p10, %p1282_p9 }
 0x406   : > { %p1280_p8 = pneg %p1279_p7 }
 0x407   : > { %p1286_p13 = por %p1285_p12, %p1284_p11 }
 0x409   : > { %p1287_p0 = pnand %p1286_p13, %p1280_p8 }
 0x40b   : > { %1290 = shalt.err (!%p1287_p0)
}
 0x40c   : > { %1205 = dma.vmem_to_hbm [thread:$0]  (%p1419_p5), %s1632_s25, 32, %s1630_s29, %s976_s13  }
 0x40d PF: > { %p1211_p1 = scmp.ge.s32.totalorder %s1325_s12, 2  ;;  %s1001_s14 = sand.u32 1, %s1313_s30  }
 0x40e   : > { %s1002_s16 = scalar_lea.sflag [#allocation3], %s1001_s14 }
 0x40f   : > { %p1208_p2 = pnand %p1211_p1, %p1423_p6 }
 0x411   : > { %1308 = dma.done.wait (!%p1208_p2), %s1002_s16, 32  }
 0x412   : > { %1310 = vsyncadd (!%p1208_p2), %s1002_s16, 4294967264  ;;  %p19_p3 = scmp.ge.s32.totalorder %s1406_s15, 4   ;;  %s1684_s30 = smov %s1317_s10 }
 0x413   : > { %s1685_s10 = smov %s1321_s11  ;;  %s1686_s11 = smov %s1417_s18 }
 0x414   : > { %s1687_s12 = smov %s1406_s15  ;;  %21 = sbr.rel (!%p19_p3) target bundleno = 3 (0x3), region = 91 }
 0x41b   :  { %1007 = vsyncpa [#allocation3], 1 }
 0x41c   :  { %1009 = vsyncpa [#allocation3 + $0x1], 1 }

</bundles_post_ra>
